<compile_context>
chip_gen: v6e
topology: v6e:2x2x1
jax: 0.10.0
libtpu: 0.0.40
codegen_flags: <defaults>
</compile_context>

<pallas_src>
import functools
import math

import jax
import jax.numpy as jnp
from jax import lax
from jax.experimental import pallas as pl
from jax.experimental.pallas import tpu as pltpu


def _round_up(x, m):
    return (x + m - 1) // m * m


def _cdiv(a, b):
    return -(-a // b)


def _mobius_epilogue(x, b_ref, scal_ref, o_ref, c):
    """Mobius addition of the matmul result x (tm, out_pad) with the bias."""
    y = b_ref[...].astype(jnp.float32)                 # (1, out_pad)
    inn = jnp.sum(x * y, axis=-1, keepdims=True)       # (tm, 1)
    nx = jnp.sum(x * x, axis=-1, keepdims=True)        # (tm, 1)
    coef_x = scal_ref[0] + (2.0 * c) * inn             # 1 + c*ny + 2c*inn
    coef_y = 1.0 - c * nx
    denom = (1.0 + c * inn) + scal_ref[1] * nx         # 1 + c*inn + c^2*ny*nx
    # EUP approximate reciprocal + one Newton step (~f32 for well-conditioned denom).
    # TODO(synk): add a second Newton step / exact divide if points near the
    #             ball boundary (denom -> 0) are expected.
    r = pl.reciprocal(denom, approx=True)
    r = r * (2.0 - denom * r)
    # Fold r into the per-row (tm, 1) coefficients: saves one full-width
    # (tm, out_pad) VPU multiply vs ((coef_x*x + coef_y*y) * r).
    o_ref[...] = ((coef_x * r) * x + (coef_y * r) * y).astype(o_ref.dtype)


def _clinear_kernel(inp_ref, wt_ref, b_ref, scal_ref, o_ref, acc_ref=None, *,
                    c, matmul_dtype):
    # inp_ref: (tm, tk)   wt_ref: (out_pad, tk)   b_ref: (1, out_pad)
    # scal_ref (SMEM, (2,)): [1 + c*ny, c^2*ny]   o_ref: (tm, out_pad)
    x_blk = inp_ref[...]
    if matmul_dtype is not None and x_blk.dtype != matmul_dtype:
        x_blk = x_blk.astype(matmul_dtype)   # per-tile VPU cast (no wrapper HBM pass)
    # Contract directly on the (out_pad, tk) weight layout; the MXU consumes the
    # transposed RHS natively (no wrapper-side weight.T, no in-kernel transpose).
    part = lax.dot_general(
        x_blk, wt_ref[...],
        dimension_numbers=(((1,), (1,)), ((), ())),
        preferred_element_type=jnp.float32)            # (tm, out_pad), f32 accumulate

    if acc_ref is None:
        # Single K block: weight tile resident, no accumulator round-trip.
        _mobius_epilogue(part, b_ref, scal_ref, o_ref, c)
    else:
        k = pl.program_id(1)

        @pl.when(k == 0)
        def _():
            acc_ref[...] = jnp.zeros_like(acc_ref)

        acc_ref[...] += part

        @pl.when(k == pl.num_programs(1) - 1)
        def _():
            _mobius_epilogue(acc_ref[...], b_ref, scal_ref, o_ref, c)


def _default_vmem_limit():
    try:
        cap = int(pltpu.get_tpu_info().vmem_capacity_bytes)
    except Exception:
        cap = 64 * 1024 * 1024          # conservative fallback: v7x per-core VMEM
    return (cap // 4) * 3               # ~96 MiB on v5e/v6e, ~48 MiB on v7x


def _select_tiles(M, in_features, out_pad, tm_req, in_sz, w_sz, out_sz,
                  budget, tk_req=None):
    """Pick (tm, tk, grid_k): shrink the weight slab (K-tiling) before ever
    shrinking the M tile; never drop tm below 128."""
    tm = max(8, min(_round_up(int(tm_req), 8), _round_up(M, 8)))
    if M > 128:
        # keep >= 2 M tiles so the "parallel" axis can shard across TensorCores
        tm = min(tm, max(128, _round_up(_cdiv(M, 2), 128)))

    def est(t, tk_, wbuf):
        return (2 * t * tk_ * in_sz            # input (double-buffered)
                + wbuf * out_pad * tk_ * w_sz  # weight (1 buffer when resident)
                + 2 * t * out_pad * out_sz     # output (double-buffered)
                + 3 * t * out_pad * 4          # f32 accumulator + epilogue temps
                + out_pad * 4 + 4096)          # bias + scalars / misc

    if tk_req is not None:
        tk = int(tk_req)
        assert tk == in_features or (tk % 128 == 0 and in_features % tk == 0), (
            "tk must divide in_features and be a multiple of 128 (or == in_features)")
    else:
        tk = in_features
        if in_features % 128 == 0:
            # shrink tk over multiples of 128 that exactly divide in_features
            while tk > 128 and est(tm, tk, 1 if tk == in_features else 2) > budget:
                nxt = None
                cand = tk - 128
                while cand >= 128:
                    if in_features % cand == 0:
                        nxt = cand
                        break
                    cand -= 128
                if nxt is None:
                    break
                tk = nxt
        # TODO(synk): if in_features is not a multiple of 128 and the weight still
        #             does not fit, zero-pad K once in the wrapper to enable K-tiling.

    grid_k = _cdiv(in_features, tk)
    wbuf = 1 if grid_k == 1 else 2
    tm_floor = min(128, _round_up(M, 8))
    while tm > tm_floor and est(tm, tk, wbuf) > budget:
        tm = max(tm_floor, _round_up(tm // 2, 8))
    return tm, tk, grid_k


def clinear_forward(inp, weight, bias, c, *, tm=256, tk=None,
                    matmul_dtype=jnp.bfloat16, vmem_limit_bytes=None):
    """inp: (B, S, in), weight: (out, in), bias: (out,). Returns (B, S, out)."""
    # TODO(synk): bias=None (cLinear(bias=False)) path not implemented; the
    #             reference cplus requires a bias vector anyway.
    B, S, in_features = inp.shape
    out_features = weight.shape[0]
    M = B * S
    out_dtype = inp.dtype

    # Lane-dense output: out-feature (lane) axis padded to a multiple of 128.
    out_pad = _round_up(out_features, 128)

    if vmem_limit_bytes is None:
        vmem_limit_bytes = _default_vmem_limit()
    vmem_limit_bytes = int(vmem_limit_bytes)

    # One-time weight cast (amortized over all M tiles). The activation is NOT
    # cast here: the kernel casts per tile, halving activation HBM traffic.
    w = weight
    if matmul_dtype is not None and w.dtype != matmul_dtype:
        w = w.astype(matmul_dtype)
    x2d = inp.reshape(M, in_features)

    b = bias.astype(jnp.float32)
    if out_pad != out_features:
        w = jnp.pad(w, ((0, out_pad - out_features), (0, 0)))
        b = jnp.pad(b, (0, out_pad - out_features))    # zero pad keeps reductions exact
    b2d = b.reshape(1, out_pad)

    # Bias-derived scalars, hoisted out of the grid and passed through SMEM:
    # scal[0] = 1 + c*ny, scal[1] = c^2*ny with ny = sum(bias^2).
    ny = jnp.sum(bias.astype(jnp.float32) ** 2)
    scal = jnp.stack([1.0 + c * ny, (c * c) * ny]).astype(jnp.float32)

    in_sz = jnp.dtype(x2d.dtype).itemsize
    w_sz = jnp.dtype(w.dtype).itemsize
    out_sz = jnp.dtype(out_dtype).itemsize
    tm_eff, tk_eff, grid_k = _select_tiles(
        M, in_features, out_pad, tm, in_sz, w_sz, out_sz,
        vmem_limit_bytes, tk_req=tk)
    grid_m = _cdiv(M, tm_eff)

    kernel = functools.partial(_clinear_kernel, c=float(c),
                               matmul_dtype=matmul_dtype)

    def _call(use_buffered):
        def bspec(shape, imap, nbuf=None):
            if use_buffered and nbuf is not None:
                return pl.BlockSpec(shape, imap, pipeline_mode=pl.Buffered(nbuf))
            return pl.BlockSpec(shape, imap)

        smem_spec = pl.BlockSpec(memory_space=pltpu.MemorySpace.SMEM)

        if grid_k > 1:
            grid = (grid_m, grid_k)
            dimsem = ("parallel", "arbitrary")
            scratch = [pltpu.VMEM((tm_eff, out_pad), jnp.float32)]
            in_specs = [
                bspec((tm_eff, tk_eff), lambda i, k: (i, k)),
                bspec((out_pad, tk_eff), lambda i, k: (0, k)),
                bspec((1, out_pad), lambda i, k: (0, 0), nbuf=1),
                smem_spec,
            ]
            out_specs = pl.BlockSpec((tm_eff, out_pad), lambda i, k: (i, 0))
        else:
            grid = (grid_m,)
            dimsem = ("parallel",)
            scratch = []
            in_specs = [
                bspec((tm_eff, tk_eff), lambda i: (i, 0)),
                bspec((out_pad, tk_eff), lambda i: (0, 0), nbuf=1),
                bspec((1, out_pad), lambda i: (0, 0), nbuf=1),
                smem_spec,
            ]
            out_specs = pl.BlockSpec((tm_eff, out_pad), lambda i: (i, 0))

        return pl.pallas_call(
            kernel,
            out_shape=jax.ShapeDtypeStruct((M, out_pad), out_dtype),
            grid_spec=pltpu.PrefetchScalarGridSpec(
                num_scalar_prefetch=0,
                grid=grid,
                in_specs=in_specs,
                out_specs=out_specs,
                scratch_shapes=scratch,
            ),
            compiler_params=pltpu.CompilerParams(
                dimension_semantics=dimsem,
                vmem_limit_bytes=vmem_limit_bytes,
            ),
        )(x2d, w, b2d, scal)

    try:
        out2d = _call(True)
    except Exception:
        # Fallback: identical kernel without the pl.Buffered single-buffer hints.
        out2d = _call(False)

    return out2d[:, :out_features].reshape(B, S, out_features)


def _reference(inp, weight, bias, c):
    x = jnp.einsum("bsi,oi->bso", inp, weight)
    y = bias
    inn = jnp.sum(x * y, axis=-1)
    nx = jnp.sum(x * x, axis=-1)
    ny = jnp.sum(y * y)
    coef_x = 1 + 2 * c * inn + c * ny
    coef_y = 1 - c * nx
    denom = 1 + c * inn + c * c * nx * ny
    z = x * coef_x[..., None] + coef_y[..., None] * y
    return z / denom[..., None]


if __name__ == "__main__":
    key = jax.random.PRNGKey(0)
    keys = jax.random.split(key, 6)
    c = 1.0

    # ---- Test 1: module-sized shapes (resident weight, grid_k == 1) ----
    B, S, in_f, out_f = 2, 8, 32, 32
    bound = 1.0 / math.sqrt(in_f)
    weight = jax.random.uniform(keys[0], (out_f, in_f), jnp.float32,
                                minval=-bound, maxval=bound)
    bias = jax.random.uniform(keys[1], (out_f,), jnp.float32,
                              minval=-bound, maxval=bound)
    inp = jax.random.normal(keys[2], (B, S, in_f), jnp.float32) * 0.1
    ref = _reference(inp, weight, bias, c)

    out_f32 = jax.block_until_ready(
        clinear_forward(inp, weight, bias, c, matmul_dtype=jnp.float32))
    assert out_f32.shape == (B, S, out_f)
    assert jnp.allclose(out_f32, ref, atol=1e-5, rtol=1e-5), "f32 mismatch vs reference"

    out_bf16 = jax.block_until_ready(clinear_forward(inp, weight, bias, c))
    assert out_bf16.shape == (B, S, out_f)
    assert jnp.allclose(out_bf16, ref, atol=1e-2, rtol=1e-2), "bf16 mismatch vs reference"

    # ---- Test 2: K-tiled accumulator + partial last M block + grid_m >= 2 ----
    B2, S2, in2, out2 = 2, 100, 256, 160
    bound2 = 1.0 / math.sqrt(in2)
    w2 = jax.random.uniform(keys[3], (out2, in2), jnp.float32,
                            minval=-bound2, maxval=bound2)
    b2 = jax.random.uniform(keys[4], (out2,), jnp.float32,
                            minval=-bound2, maxval=bound2)
    inp2 = jax.random.normal(keys[5], (B2, S2, in2), jnp.float32) * 0.1
    ref2 = _reference(inp2, w2, b2, c)

    out2_f32 = jax.block_until_ready(
        clinear_forward(inp2, w2, b2, c, matmul_dtype=jnp.float32, tk=128))
    assert out2_f32.shape == (B2, S2, out2)
    assert jnp.allclose(out2_f32, ref2, atol=1e-3, rtol=1e-3), \
        "K-tiled f32 mismatch vs reference"

    print("KERNEL_OK")
</pallas_src>

<mosaic_0001>
module attributes {stable_mosaic.version = 11 : i64} {
  func.func @_clinear_kernel(%arg0: i32, %arg1: memref<16x32xf32, #tpu.memory_space<vmem>>, %arg2: memref<128x32xf32, #tpu.memory_space<vmem>>, %arg3: memref<1x128xf32, #tpu.memory_space<vmem>>, %arg4: memref<2xf32, #tpu.memory_space<smem>>, %arg5: memref<16x128xf32, #tpu.memory_space<vmem>>) attributes {dimension_semantics = [#tpu.dimension_semantics<parallel>], iteration_bounds = array<i64: 1>, scalar_prefetch = 0 : i64, scratch_operands = 0 : i64, tpu.core_type = #tpu.core_type<tc>, window_params = [{transform_indices = @transform_0, window_bounds = array<i64: 16, 32>}, {pipeline_mode = #tpu.pipeline_mode<synchronous>, transform_indices = @transform_1, window_bounds = array<i64: 128, 32>}, {pipeline_mode = #tpu.pipeline_mode<synchronous>, transform_indices = @transform_2, window_bounds = array<i64: 1, 128>}, {transform_indices = @transform_3, window_bounds = array<i64: 2>}, {transform_indices = @transform_4, window_bounds = array<i64: 16, 128>}]} {
    %c0 = arith.constant 0 : index
    %c0_0 = arith.constant 0 : index
    %0 = vector.load %arg1[%c0, %c0_0] : memref<16x32xf32, #tpu.memory_space<vmem>>, vector<16x32xf32>
    %c0_1 = arith.constant 0 : index
    %c0_2 = arith.constant 0 : index
    %1 = vector.load %arg2[%c0_1, %c0_2] : memref<128x32xf32, #tpu.memory_space<vmem>>, vector<128x32xf32>
    %cst = arith.constant dense<0.000000e+00> : vector<16x128xf32>
    %2 = tpu.matmul %0, %1, %cst {dimension_numbers = #tpu.dot_dimension_numbers<[1], [1], [0], [0], [0, 0, 1, 0], [], []>} : vector<16x32xf32>, vector<128x32xf32>, vector<16x128xf32> -> vector<16x128xf32>
    %c0_3 = arith.constant 0 : index
    %c0_4 = arith.constant 0 : index
    %3 = vector.load %arg3[%c0_3, %c0_4] : memref<1x128xf32, #tpu.memory_space<vmem>>, vector<1x128xf32>
    %4 = vector.broadcast %3 : vector<1x128xf32> to vector<16x128xf32>
    %5 = arith.mulf %2, %4 : vector<16x128xf32>
    %cst_5 = arith.constant dense<0.000000e+00> : vector<16xf32>
    %6 = vector.multi_reduction <add>, %5, %cst_5 [1] : vector<16x128xf32> to vector<16xf32>
    %7 = vector.shape_cast %6 : vector<16xf32> to vector<16x1xf32>
    %8 = arith.mulf %2, %2 : vector<16x128xf32>
    %cst_6 = arith.constant dense<0.000000e+00> : vector<16xf32>
    %9 = vector.multi_reduction <add>, %8, %cst_6 [1] : vector<16x128xf32> to vector<16xf32>
    %10 = vector.shape_cast %9 : vector<16xf32> to vector<16x1xf32>
    %c0_7 = arith.constant 0 : index
    %11 = memref.load %arg4[%c0_7] : memref<2xf32, #tpu.memory_space<smem>>
    %cst_8 = arith.constant 2.000000e+00 : f32
    %12 = vector.broadcast %cst_8 : f32 to vector<16x1xf32>
    %13 = arith.mulf %12, %7 : vector<16x1xf32>
    %14 = vector.broadcast %11 : f32 to vector<16x1xf32>
    %15 = arith.addf %14, %13 : vector<16x1xf32>
    %cst_9 = arith.constant 1.000000e+00 : f32
    %16 = vector.broadcast %cst_9 : f32 to vector<16x1xf32>
    %17 = arith.mulf %16, %10 : vector<16x1xf32>
    %cst_10 = arith.constant 1.000000e+00 : f32
    %18 = vector.broadcast %cst_10 : f32 to vector<16x1xf32>
    %19 = arith.subf %18, %17 : vector<16x1xf32>
    %cst_11 = arith.constant 1.000000e+00 : f32
    %20 = vector.broadcast %cst_11 : f32 to vector<16x1xf32>
    %21 = arith.mulf %20, %7 : vector<16x1xf32>
    %cst_12 = arith.constant 1.000000e+00 : f32
    %22 = vector.broadcast %cst_12 : f32 to vector<16x1xf32>
    %23 = arith.addf %22, %21 : vector<16x1xf32>
    %c1 = arith.constant 1 : index
    %24 = memref.load %arg4[%c1] : memref<2xf32, #tpu.memory_space<smem>>
    %25 = vector.broadcast %24 : f32 to vector<16x1xf32>
    %26 = arith.mulf %25, %10 : vector<16x1xf32>
    %27 = arith.addf %23, %26 : vector<16x1xf32>
    %28 = tpu.reciprocal %27 {approx = true} : vector<16x1xf32> -> vector<16x1xf32>
    %29 = arith.mulf %27, %28 : vector<16x1xf32>
    %cst_13 = arith.constant 2.000000e+00 : f32
    %30 = vector.broadcast %cst_13 : f32 to vector<16x1xf32>
    %31 = arith.subf %30, %29 : vector<16x1xf32>
    %32 = arith.mulf %28, %31 : vector<16x1xf32>
    %33 = arith.mulf %15, %32 : vector<16x1xf32>
    %34 = vector.broadcast %33 : vector<16x1xf32> to vector<16x128xf32>
    %35 = arith.mulf %34, %2 : vector<16x128xf32>
    %36 = arith.mulf %19, %32 : vector<16x1xf32>
    %37 = vector.broadcast %36 : vector<16x1xf32> to vector<16x128xf32>
    %38 = vector.broadcast %3 : vector<1x128xf32> to vector<16x128xf32>
    %39 = arith.mulf %37, %38 : vector<16x128xf32>
    %40 = arith.addf %35, %39 : vector<16x128xf32>
    %c0_14 = arith.constant 0 : index
    %c0_15 = arith.constant 0 : index
    %41 = vector.load %arg5[%c0_14, %c0_15] : memref<16x128xf32, #tpu.memory_space<vmem>>, vector<16x128xf32>
    tpu.vector_store %arg5[%c0_14, %c0_15], %40 {strides = array<i32>} : memref<16x128xf32, #tpu.memory_space<vmem>>, vector<16x128xf32>,
    return
  }
  func.func @transform_0(%arg0: i32) -> (i32, i32) {
    %c0_i32 = arith.constant 0 : i32
    %c0_i32_0 = arith.constant 0 : i32
    return %arg0, %c0_i32 : i32, i32
  }
  func.func @transform_1(%arg0: i32) -> (i32, i32) {
    %c0_i32 = arith.constant 0 : i32
    %c0_i32_0 = arith.constant 0 : i32
    %c0_i32_1 = arith.constant 0 : i32
    return %c0_i32, %c0_i32_0 : i32, i32
  }
  func.func @transform_2(%arg0: i32) -> (i32, i32) {
    %c0_i32 = arith.constant 0 : i32
    %c0_i32_0 = arith.constant 0 : i32
    %c0_i32_1 = arith.constant 0 : i32
    return %c0_i32, %c0_i32_0 : i32, i32
  }
  func.func @transform_3(%arg0: i32) -> i32 {
    %c0_i32 = arith.constant 0 : i32
    %c0_i32_0 = arith.constant 0 : i32
    return %c0_i32 : i32
  }
  func.func @transform_4(%arg0: i32) -> (i32, i32) {
    %c0_i32 = arith.constant 0 : i32
    %c0_i32_0 = arith.constant 0 : i32
    return %arg0, %c0_i32 : i32, i32
  }
}

module attributes {stable_mosaic.version = 11 : i64} {
  func.func @_clinear_kernel(%arg0: i32, %arg1: memref<16x32xf32, #tpu.memory_space<vmem>>, %arg2: memref<128x32xf32, #tpu.memory_space<vmem>>, %arg3: memref<1x128xf32, #tpu.memory_space<vmem>>, %arg4: memref<2xf32, #tpu.memory_space<smem>>, %arg5: memref<16x128xf32, #tpu.memory_space<vmem>>) attributes {dimension_semantics = [#tpu.dimension_semantics<parallel>], iteration_bounds = array<i64: 1>, scalar_prefetch = 0 : i64, scratch_operands = 0 : i64, tpu.core_type = #tpu.core_type<tc>, window_params = [{transform_indices = @transform_0, window_bounds = array<i64: 16, 32>}, {pipeline_mode = #tpu.pipeline_mode<synchronous>, transform_indices = @transform_1, window_bounds = array<i64: 128, 32>}, {pipeline_mode = #tpu.pipeline_mode<synchronous>, transform_indices = @transform_2, window_bounds = array<i64: 1, 128>}, {transform_indices = @transform_3, window_bounds = array<i64: 2>}, {transform_indices = @transform_4, window_bounds = array<i64: 16, 128>}]} {
    %c0 = arith.constant 0 : index
    %c0_0 = arith.constant 0 : index
    %0 = vector.load %arg1[%c0, %c0_0] : memref<16x32xf32, #tpu.memory_space<vmem>>, vector<16x32xf32>
    %c0_1 = arith.constant 0 : index
    %c0_2 = arith.constant 0 : index
    %1 = vector.load %arg2[%c0_1, %c0_2] : memref<128x32xf32, #tpu.memory_space<vmem>>, vector<128x32xf32>
    %cst = arith.constant dense<0.000000e+00> : vector<16x128xf32>
    %2 = tpu.matmul %0, %1, %cst {dimension_numbers = #tpu.dot_dimension_numbers<[1], [1], [0], [0], [0, 0, 1, 0], [], []>} : vector<16x32xf32>, vector<128x32xf32>, vector<16x128xf32> -> vector<16x128xf32>
    %c0_3 = arith.constant 0 : index
    %c0_4 = arith.constant 0 : index
    %3 = vector.load %arg3[%c0_3, %c0_4] : memref<1x128xf32, #tpu.memory_space<vmem>>, vector<1x128xf32>
    %4 = vector.broadcast %3 : vector<1x128xf32> to vector<16x128xf32>
    %5 = arith.mulf %2, %4 : vector<16x128xf32>
    %cst_5 = arith.constant dense<0.000000e+00> : vector<16xf32>
    %6 = vector.multi_reduction <add>, %5, %cst_5 [1] : vector<16x128xf32> to vector<16xf32>
    %7 = vector.shape_cast %6 : vector<16xf32> to vector<16x1xf32>
    %8 = arith.mulf %2, %2 : vector<16x128xf32>
    %cst_6 = arith.constant dense<0.000000e+00> : vector<16xf32>
    %9 = vector.multi_reduction <add>, %8, %cst_6 [1] : vector<16x128xf32> to vector<16xf32>
    %10 = vector.shape_cast %9 : vector<16xf32> to vector<16x1xf32>
    %c0_7 = arith.constant 0 : index
    %11 = memref.load %arg4[%c0_7] : memref<2xf32, #tpu.memory_space<smem>>
    %cst_8 = arith.constant 2.000000e+00 : f32
    %12 = vector.broadcast %cst_8 : f32 to vector<16x1xf32>
    %13 = arith.mulf %12, %7 : vector<16x1xf32>
    %14 = vector.broadcast %11 : f32 to vector<16x1xf32>
    %15 = arith.addf %14, %13 : vector<16x1xf32>
    %cst_9 = arith.constant 1.000000e+00 : f32
    %16 = vector.broadcast %cst_9 : f32 to vector<16x1xf32>
    %17 = arith.mulf %16, %10 : vector<16x1xf32>
    %cst_10 = arith.constant 1.000000e+00 : f32
    %18 = vector.broadcast %cst_10 : f32 to vector<16x1xf32>
    %19 = arith.subf %18, %17 : vector<16x1xf32>
    %cst_11 = arith.constant 1.000000e+00 : f32
    %20 = vector.broadcast %cst_11 : f32 to vector<16x1xf32>
    %21 = arith.mulf %20, %7 : vector<16x1xf32>
    %cst_12 = arith.constant 1.000000e+00 : f32
    %22 = vector.broadcast %cst_12 : f32 to vector<16x1xf32>
    %23 = arith.addf %22, %21 : vector<16x1xf32>
    %c1 = arith.constant 1 : index
    %24 = memref.load %arg4[%c1] : memref<2xf32, #tpu.memory_space<smem>>
    %25 = vector.broadcast %24 : f32 to vector<16x1xf32>
    %26 = arith.mulf %25, %10 : vector<16x1xf32>
    %27 = arith.addf %23, %26 : vector<16x1xf32>
    %28 = tpu.reciprocal %27 {approx = true} : vector<16x1xf32> -> vector<16x1xf32>
    %29 = arith.mulf %27, %28 : vector<16x1xf32>
    %cst_13 = arith.constant 2.000000e+00 : f32
    %30 = vector.broadcast %cst_13 : f32 to vector<16x1xf32>
    %31 = arith.subf %30, %29 : vector<16x1xf32>
    %32 = arith.mulf %28, %31 : vector<16x1xf32>
    %33 = arith.mulf %15, %32 : vector<16x1xf32>
    %34 = vector.broadcast %33 : vector<16x1xf32> to vector<16x128xf32>
    %35 = arith.mulf %34, %2 : vector<16x128xf32>
    %36 = arith.mulf %19, %32 : vector<16x1xf32>
    %37 = vector.broadcast %36 : vector<16x1xf32> to vector<16x128xf32>
    %38 = vector.broadcast %3 : vector<1x128xf32> to vector<16x128xf32>
    %39 = arith.mulf %37, %38 : vector<16x128xf32>
    %40 = arith.addf %35, %39 : vector<16x128xf32>
    %c0_14 = arith.constant 0 : index
    %c0_15 = arith.constant 0 : index
    %41 = vector.load %arg5[%c0_14, %c0_15] : memref<16x128xf32, #tpu.memory_space<vmem>>, vector<16x128xf32>
    tpu.vector_store %arg5[%c0_14, %c0_15], %40 {strides = array<i32>} : memref<16x128xf32, #tpu.memory_space<vmem>>, vector<16x128xf32>,
    return
  }
  func.func @transform_0(%arg0: i32) -> (i32, i32) {
    %c0_i32 = arith.constant 0 : i32
    %c0_i32_0 = arith.constant 0 : i32
    return %arg0, %c0_i32 : i32, i32
  }
  func.func @transform_1(%arg0: i32) -> (i32, i32) {
    %c0_i32 = arith.constant 0 : i32
    %c0_i32_0 = arith.constant 0 : i32
    %c0_i32_1 = arith.constant 0 : i32
    return %c0_i32, %c0_i32_0 : i32, i32
  }
  func.func @transform_2(%arg0: i32) -> (i32, i32) {
    %c0_i32 = arith.constant 0 : i32
    %c0_i32_0 = arith.constant 0 : i32
    %c0_i32_1 = arith.constant 0 : i32
    return %c0_i32, %c0_i32_0 : i32, i32
  }
  func.func @transform_3(%arg0: i32) -> i32 {
    %c0_i32 = arith.constant 0 : i32
    %c0_i32_0 = arith.constant 0 : i32
    return %c0_i32 : i32
  }
  func.func @transform_4(%arg0: i32) -> (i32, i32) {
    %c0_i32 = arith.constant 0 : i32
    %c0_i32_0 = arith.constant 0 : i32
    return %arg0, %c0_i32 : i32, i32
  }
}

</mosaic_0001>

<bundles_post_ra>
// kernel: tpu_custom_call.1
= control target key start
LH: loop header
LB: loop body
LE: loop exit
PB: predicated region body
PF: predicated region fallthrough
CT: control target
= control target key end

     0   :  { %9 = vsyncpa [#allocation4], 0  ;;  %s494_s0 = inlined_call_operand.vmem [shape: f32[16,32], index: 0, kind: input, shape index: {}]   ;;  %s495_s1 = inlined_call_operand.vmem [shape: f32[128,32], index: 1, kind: input, shape index: {}]   ;;  %s496_s2 = inlined_call_operand.vmem [shape: f32[1,128], index: 2, kind: input, shape index: {}]   ;;  %s497_s3 = inlined_call_operand.vmem [shape: f32[2], index: 3, kind: input, shape index: {}]   ;;  %s498_s4 = inlined_call_operand.hbm [shape: f32[16,128], index: 4, kind: output, shape index: {}]  }
   0x1   :  { %10 = vsyncpa [#allocation3], 0  ;;  %s23_s17 = sshll.u32 %s497_s3, 4  ;;  %s24_s17 = int_to_ptr.vmem [resolvable:$true] %s23_s17 }
   0x2   :  { %s332_s18 = scalar_lea.vmem %s24_s17, 16  ;;  %p337_p1 = scmp.lt.s32.totalorder %s24_s17, %s24_s17 }
   0x3   :  { %p333_p0 = scmp.ne.s32.totalorder %s24_s17, %s332_s18  ;;  %p338_p2 = scmp.lt.s32.totalorder %s332_s18, %s332_s18 }
   0x5   :  { %p339_p3 = por %p338_p2, %p337_p1 }
   0x7   :  { %p340_p4 = pnand %p339_p3, %p333_p0 }
   0x9   :  { %343 = shalt.err (!%p340_p4)
}
   0xa   :  { %s368_s19 = smov [#allocation2]  }
   0xb   :  { %26 = dma.vmem_to_smem %s24_s17, 16, %s368_s19, [#allocation4]  }
   0xc   :  { %364 = dma.done.wait [#allocation4], 16  }
   0xd   :  { %365 = vsyncadd [#allocation4], 4294967280 }
   0xe   :  { %30 = sfence }
   0xf   :  { %v48_v0 = vld [vmem:[%s495_s1 + $0x78] sm:$0xff]  ;;  %vm49_vm0 = vcmask 261120   ;;  %v47_v1 = vld [vmem:[%s495_s1 + $0x70] sm:$0xff]  ;;  %v46_v2 = vld [vmem:[%s495_s1 + $0x68] sm:$0xff] }
  0x10   :  { %289 = vmatprep.subr.msk.mxu0 %vm49_vm0, %v48_v0  ;;  %v31_v3 = vld [vmem:[%s494_s0] sm:$0xff]  ;;  %v44_v5 = vld [vmem:[%s495_s1 + $0x58] sm:$0xff]  ;;  %v43_v6 = vld [vmem:[%s495_s1 + $0x50] sm:$0xff] }
  0x11   :  { %290 = vmatpush3.xpose.msk.msra.mxu0 %vm49_vm0, %v48_v0  ;;  %321 = vmatprep.mubr.msk.f32.mxu0 %vm49_vm0, %v31_v3  ;;  %v45_v4 = vld [vmem:[%s495_s1 + $0x60] sm:$0xff]  ;;  %v42_v7 = vld [vmem:[%s495_s1 + $0x48] sm:$0xff]  ;;  %v40_v9 = vld [vmem:[%s495_s1 + $0x38] sm:$0xff] }
  0x12   :  { %291 = vmatprep.subr.msk.mxu0 %vm49_vm0, %v47_v1  ;;  %v41_v8 = vld [vmem:[%s495_s1 + $0x40] sm:$0xff]  ;;  %v39_v10 = vld [vmem:[%s495_s1 + $0x30] sm:$0xff]  ;;  %v38_v11 = vld [vmem:[%s495_s1 + $0x28] sm:$0xff] }
  0x13   :  { %v37_v12 = vld [vmem:[%s495_s1 + $0x20] sm:$0xff]  ;;  %v36_v13 = vld [vmem:[%s495_s1 + $0x18] sm:$0xff]  ;;  %v35_v14 = vld [vmem:[%s495_s1 + $0x10] sm:$0xff] }
  0x14   :  { %v34_v15 = vld [vmem:[%s495_s1 + $0x8] sm:$0xff]  ;;  %v33_v16 = vld [vmem:[%s495_s1] sm:$0xff]  ;;  %s270_s1 = sld [smem:[#allocation2 + $0x1]] }
  0x15   :  { %292 = vmatpush3.xpose.msk.msra.mxu0 %vm49_vm0, %v47_v1  ;;  %v32_v17 = vld [vmem:[%s494_s0 + $0x8] sm:$0xff]  ;;  %v269_v20 = vld [vmem:[%s496_s2] ss:$0 sm:$0xff]  ;;  %s198_s0 = sld [smem:[#allocation2]]  ;;  %s369_s2 = smov [#allocation5]  }
  0x16   :  { %293 = vmatprep.subr.msk.mxu0 %vm49_vm0, %v46_v2  ;;  %s239_s30 = sshll.u32 %s369_s2, 4  ;;  %s240_s30 = int_to_ptr.vmem [resolvable:$true] %s239_s30 }
  0x17   :  { %s344_s5 = scalar_lea.vmem %s240_s30, 256  ;;  %p349_p6 = scmp.lt.s32.totalorder %s240_s30, %s240_s30 }
  0x18   :  { %p345_p5 = scmp.ne.s32.totalorder %s240_s30, %s344_s5  ;;  %p350_p7 = scmp.lt.s32.totalorder %s344_s5, %s344_s5 }
  0x19   :  { %294 = vmatpush3.xpose.msk.msra.mxu0 %vm49_vm0, %v46_v2 }
  0x1a   :  { %295 = vmatprep.subr.msk.mxu0 %vm49_vm0, %v45_v4  ;;  %v209_v25 = vstv %s270_s1  ;;  %p351_p8 = por %p350_p7, %p349_p6 }
  0x1b   :  { %v201_v39 = vstv %s198_s0 }
  0x1c   :  { %p352_p9 = pnand %p351_p8, %p345_p5 }
  0x1d   :  { %296 = vmatpush3.xpose.msk.msra.mxu0 %vm49_vm0, %v45_v4 }
  0x1e   :  { %297 = vmatprep.subr.msk.mxu0 %vm49_vm0, %v44_v5 }
  0x21   :  { %298 = vmatpush3.xpose.msk.msra.mxu0 %vm49_vm0, %v44_v5 }
  0x22   :  { %299 = vmatprep.subr.msk.mxu0 %vm49_vm0, %v43_v6 }
  0x25   :  { %300 = vmatpush3.xpose.msk.msra.mxu0 %vm49_vm0, %v43_v6 }
  0x26   :  { %301 = vmatprep.subr.msk.mxu0 %vm49_vm0, %v42_v7 }
  0x29   :  { %302 = vmatpush3.xpose.msk.msra.mxu0 %vm49_vm0, %v42_v7 }
  0x2a   :  { %303 = vmatprep.subr.msk.mxu0 %vm49_vm0, %v41_v8 }
  0x2d   :  { %304 = vmatpush3.xpose.msk.msra.mxu0 %vm49_vm0, %v41_v8 }
  0x2e   :  { %305 = vmatprep.subr.msk.mxu0 %vm49_vm0, %v40_v9 }
  0x31   :  { %306 = vmatpush3.xpose.msk.msra.mxu0 %vm49_vm0, %v40_v9 }
  0x32   :  { %307 = vmatprep.subr.msk.mxu0 %vm49_vm0, %v39_v10 }
  0x35   :  { %308 = vmatpush3.xpose.msk.msra.mxu0 %vm49_vm0, %v39_v10 }
  0x36   :  { %309 = vmatprep.subr.msk.mxu0 %vm49_vm0, %v38_v11 }
  0x39   :  { %310 = vmatpush3.xpose.msk.msra.mxu0 %vm49_vm0, %v38_v11 }
  0x3a   :  { %311 = vmatprep.subr.msk.mxu0 %vm49_vm0, %v37_v12 }
  0x3d   :  { %312 = vmatpush3.xpose.msk.msra.mxu0 %vm49_vm0, %v37_v12 }
  0x3e   :  { %313 = vmatprep.subr.msk.mxu0 %vm49_vm0, %v36_v13 }
  0x41   :  { %314 = vmatpush3.xpose.msk.msra.mxu0 %vm49_vm0, %v36_v13 }
  0x42   :  { %315 = vmatprep.subr.msk.mxu0 %vm49_vm0, %v35_v14 }
  0x45   :  { %316 = vmatpush3.xpose.msk.msra.mxu0 %vm49_vm0, %v35_v14 }
  0x46   :  { %317 = vmatprep.subr.msk.mxu0 %vm49_vm0, %v34_v15 }
  0x49   :  { %318 = vmatpush3.xpose.msk.msra.mxu0 %vm49_vm0, %v34_v15 }
  0x4a   :  { %319 = vmatprep.subr.msk.mxu0 %vm49_vm0, %v33_v16 }
  0x4d   :  { %320 = vmatpush3.xpose.msk.msra.mxu0 %vm49_vm0, %v33_v16 }
  0x50   :  { %322 = vmatmul.mubr.msk.f32.vlgmr.msra.gmra.mxu0 %vm49_vm0, %v32_v17 }
 0x110   :  { %v323_v18 = vpop.f32.mrf.mxu0 }
 0x111   :  { %v193_v23 = vmul.f32 %v323_v18, %v323_v18  ;;  %v187_v24 = vmul.f32 %v323_v18, %v269_v20 }
 0x112   :  { %v170_v19 = vpop.f32.mrf.mxu0 }
 0x113   :  { %v192_v21 = vmul.f32 %v170_v19, %v170_v19  ;;  %v186_v22 = vmul.f32 %v269_v20, %v170_v19 }
 0x115   :  { %194 = vadd.xlane.f32.xlu1 %v192_v21  ;;  %188 = vadd.xlane.f32.xlu0 %v186_v22 }
 0x119   :  { %196 = vadd.xlane.f32.xlu1 %v193_v23  ;;  %190 = vadd.xlane.f32.xlu0 %v187_v24 }
 0x19e   :  { %v195_v26 = vpop.xlane.xlu1 %194  ;;  %v189_v27 = vpop.xlane.xlu0 %188 }
 0x19f   :  { %v206_v28 = vadd.f32 1.0, %v189_v27  ;;  %v210_v29 = vmul.f32 %v209_v25, %v195_v26  ;;  %v199_v37 = vmul.f32 2.0, %v189_v27  ;;  %v204_v42 = vsub.f32 1.0, %v195_v26 }
 0x1a1   :  { %v212_v30 = vadd.f32 %v210_v29, %v206_v28  ;;  %v202_v43 = vadd.f32 %v201_v39, %v199_v37 }
 0x1a2   :  { %v197_v31 = vpop.xlane.xlu1 %196  ;;  %v191_v32 = vpop.xlane.xlu0 %190 }
 0x1a3   :  { %v211_v33 = vmul.f32 %v209_v25, %v197_v31  ;;  %328 = vrcp.f32 %v212_v30  ;;  %v207_v34 = vadd.f32 1.0, %v191_v32  ;;  %v200_v45 = vmul.f32 2.0, %v191_v32 }
 0x1a4   :  { %v205_v52 = vsub.f32 1.0, %v197_v31 }
 0x1a5   :  { %v213_v35 = vadd.f32 %v211_v33, %v207_v34  ;;  %v203_v53 = vadd.f32 %v201_v39, %v200_v45 }
 0x1a7   :  { %330 = vrcp.f32 %v213_v35 }
 0x1b0   :  { %v329_v36 = vpop.eup %328 }
 0x1b1   :  { %v216_v38 = vmul.f32 %v329_v36, %v212_v30 }
 0x1b3   :  { %v218_v40 = vsub.f32 2.0, %v216_v38 }
 0x1b4   :  { %v331_v41 = vpop.eup %330 }
 0x1b5   :  { %v220_v44 = vmul.f32 %v329_v36, %v218_v40  ;;  %v217_v46 = vmul.f32 %v331_v41, %v213_v35 }
 0x1b7   :  { %v222_v47 = vmul.f32 %v220_v44, %v202_v43  ;;  %v226_v48 = vmul.f32 %v220_v44, %v204_v42  ;;  %v219_v49 = vsub.f32 2.0, %v217_v46 }
 0x1b9   :  { %v224_v50 = vmul.f32 %v222_v47, %v170_v19  ;;  %v228_v51 = vmul.f32 %v269_v20, %v226_v48  ;;  %v221_v54 = vmul.f32 %v331_v41, %v219_v49 }
 0x1bb   :  { %v230_v55 = vadd.f32 %v228_v51, %v224_v50  ;;  %v223_v56 = vmul.f32 %v221_v54, %v203_v53  ;;  %v227_v57 = vmul.f32 %v221_v54, %v205_v52 }
 0x1bd   :  { %232 = vst [vmem:[#allocation5] sm:$0xff] %v230_v55  ;;  %v225_v58 = vmul.f32 %v323_v18, %v223_v56  ;;  %v229_v59 = vmul.f32 %v269_v20, %v227_v57 }
 0x1bf   :  { %v231_v60 = vadd.f32 %v229_v59, %v225_v58 }
 0x1c1   :  { %233 = vst [vmem:[#allocation5 + $0x8] sm:$0xff] %v231_v60 }
 0x1c2   :  { %355 = shalt.err (!%p352_p9)
}
 0x1c3   :  { %s370_s6 = smov 128   ;;  %s371_s7 = smov 8  }
 0x1c4   :  { %245 = dma.vmem_to_hbm [thread:$0]  %s240_s30, 256, %s498_s4, [#allocation3], %s370_s6, %s370_s6, %s371_s7  }
 0x1c5   :  { %366 = dma.done.wait [#allocation3], 256  }
 0x1c6   :  { %367 = vsyncadd [#allocation3], 4294967040 }
 0x1c7   :  { %249 = vsyncpa [#allocation3], 1 }
 0x1c8   :  { %250 = vsyncpa [#allocation4], 1 }

// kernel: tpu_custom_call.1
= control target key start
LH: loop header
LB: loop body
LE: loop exit
PB: predicated region body
PF: predicated region fallthrough
CT: control target
= control target key end

     0   :  { %9 = vsyncpa [#allocation4], 0  ;;  %s494_s0 = inlined_call_operand.vmem [shape: f32[16,32], index: 0, kind: input, shape index: {}]   ;;  %s495_s1 = inlined_call_operand.vmem [shape: f32[128,32], index: 1, kind: input, shape index: {}]   ;;  %s496_s2 = inlined_call_operand.vmem [shape: f32[1,128], index: 2, kind: input, shape index: {}]   ;;  %s497_s3 = inlined_call_operand.vmem [shape: f32[2], index: 3, kind: input, shape index: {}]   ;;  %s498_s4 = inlined_call_operand.hbm [shape: f32[16,128], index: 4, kind: output, shape index: {}]  }
   0x1   :  { %10 = vsyncpa [#allocation3], 0  ;;  %s23_s17 = sshll.u32 %s497_s3, 4  ;;  %s24_s17 = int_to_ptr.vmem [resolvable:$true] %s23_s17 }
   0x2   :  { %s332_s18 = scalar_lea.vmem %s24_s17, 16  ;;  %p337_p1 = scmp.lt.s32.totalorder %s24_s17, %s24_s17 }
   0x3   :  { %p333_p0 = scmp.ne.s32.totalorder %s24_s17, %s332_s18  ;;  %p338_p2 = scmp.lt.s32.totalorder %s332_s18, %s332_s18 }
   0x5   :  { %p339_p3 = por %p338_p2, %p337_p1 }
   0x7   :  { %p340_p4 = pnand %p339_p3, %p333_p0 }
   0x9   :  { %343 = shalt.err (!%p340_p4)
}
   0xa   :  { %s368_s19 = smov [#allocation2]  }
   0xb   :  { %26 = dma.vmem_to_smem %s24_s17, 16, %s368_s19, [#allocation4]  }
   0xc   :  { %364 = dma.done.wait [#allocation4], 16  }
   0xd   :  { %365 = vsyncadd [#allocation4], 4294967280 }
   0xe   :  { %30 = sfence }
   0xf   :  { %v48_v0 = vld [vmem:[%s495_s1 + $0x78] sm:$0xff]  ;;  %vm49_vm0 = vcmask 261120   ;;  %v47_v1 = vld [vmem:[%s495_s1 + $0x70] sm:$0xff]  ;;  %v46_v2 = vld [vmem:[%s495_s1 + $0x68] sm:$0xff] }
  0x10   :  { %289 = vmatprep.subr.msk.mxu0 %vm49_vm0, %v48_v0  ;;  %v31_v3 = vld [vmem:[%s494_s0] sm:$0xff]  ;;  %v44_v5 = vld [vmem:[%s495_s1 + $0x58] sm:$0xff]  ;;  %v43_v6 = vld [vmem:[%s495_s1 + $0x50] sm:$0xff] }
  0x11   :  { %290 = vmatpush3.xpose.msk.msra.mxu0 %vm49_vm0, %v48_v0  ;;  %321 = vmatprep.mubr.msk.f32.mxu0 %vm49_vm0, %v31_v3  ;;  %v45_v4 = vld [vmem:[%s495_s1 + $0x60] sm:$0xff]  ;;  %v42_v7 = vld [vmem:[%s495_s1 + $0x48] sm:$0xff]  ;;  %v40_v9 = vld [vmem:[%s495_s1 + $0x38] sm:$0xff] }
  0x12   :  { %291 = vmatprep.subr.msk.mxu0 %vm49_vm0, %v47_v1  ;;  %v41_v8 = vld [vmem:[%s495_s1 + $0x40] sm:$0xff]  ;;  %v39_v10 = vld [vmem:[%s495_s1 + $0x30] sm:$0xff]  ;;  %v38_v11 = vld [vmem:[%s495_s1 + $0x28] sm:$0xff] }
  0x13   :  { %v37_v12 = vld [vmem:[%s495_s1 + $0x20] sm:$0xff]  ;;  %v36_v13 = vld [vmem:[%s495_s1 + $0x18] sm:$0xff]  ;;  %v35_v14 = vld [vmem:[%s495_s1 + $0x10] sm:$0xff] }
  0x14   :  { %v34_v15 = vld [vmem:[%s495_s1 + $0x8] sm:$0xff]  ;;  %v33_v16 = vld [vmem:[%s495_s1] sm:$0xff]  ;;  %s270_s1 = sld [smem:[#allocation2 + $0x1]] }
  0x15   :  { %292 = vmatpush3.xpose.msk.msra.mxu0 %vm49_vm0, %v47_v1  ;;  %v32_v17 = vld [vmem:[%s494_s0 + $0x8] sm:$0xff]  ;;  %v269_v20 = vld [vmem:[%s496_s2] ss:$0 sm:$0xff]  ;;  %s198_s0 = sld [smem:[#allocation2]]  ;;  %s369_s2 = smov [#allocation5]  }
  0x16   :  { %293 = vmatprep.subr.msk.mxu0 %vm49_vm0, %v46_v2  ;;  %s239_s30 = sshll.u32 %s369_s2, 4  ;;  %s240_s30 = int_to_ptr.vmem [resolvable:$true] %s239_s30 }
  0x17   :  { %s344_s5 = scalar_lea.vmem %s240_s30, 256  ;;  %p349_p6 = scmp.lt.s32.totalorder %s240_s30, %s240_s30 }
  0x18   :  { %p345_p5 = scmp.ne.s32.totalorder %s240_s30, %s344_s5  ;;  %p350_p7 = scmp.lt.s32.totalorder %s344_s5, %s344_s5 }
  0x19   :  { %294 = vmatpush3.xpose.msk.msra.mxu0 %vm49_vm0, %v46_v2 }
  0x1a   :  { %295 = vmatprep.subr.msk.mxu0 %vm49_vm0, %v45_v4  ;;  %v209_v25 = vstv %s270_s1  ;;  %p351_p8 = por %p350_p7, %p349_p6 }
  0x1b   :  { %v201_v39 = vstv %s198_s0 }
  0x1c   :  { %p352_p9 = pnand %p351_p8, %p345_p5 }
  0x1d   :  { %296 = vmatpush3.xpose.msk.msra.mxu0 %vm49_vm0, %v45_v4 }
  0x1e   :  { %297 = vmatprep.subr.msk.mxu0 %vm49_vm0, %v44_v5 }
  0x21   :  { %298 = vmatpush3.xpose.msk.msra.mxu0 %vm49_vm0, %v44_v5 }
  0x22   :  { %299 = vmatprep.subr.msk.mxu0 %vm49_vm0, %v43_v6 }
  0x25   :  { %300 = vmatpush3.xpose.msk.msra.mxu0 %vm49_vm0, %v43_v6 }
  0x26   :  { %301 = vmatprep.subr.msk.mxu0 %vm49_vm0, %v42_v7 }
  0x29   :  { %302 = vmatpush3.xpose.msk.msra.mxu0 %vm49_vm0, %v42_v7 }
  0x2a   :  { %303 = vmatprep.subr.msk.mxu0 %vm49_vm0, %v41_v8 }
  0x2d   :  { %304 = vmatpush3.xpose.msk.msra.mxu0 %vm49_vm0, %v41_v8 }
  0x2e   :  { %305 = vmatprep.subr.msk.mxu0 %vm49_vm0, %v40_v9 }
  0x31   :  { %306 = vmatpush3.xpose.msk.msra.mxu0 %vm49_vm0, %v40_v9 }
  0x32   :  { %307 = vmatprep.subr.msk.mxu0 %vm49_vm0, %v39_v10 }
  0x35   :  { %308 = vmatpush3.xpose.msk.msra.mxu0 %vm49_vm0, %v39_v10 }
  0x36   :  { %309 = vmatprep.subr.msk.mxu0 %vm49_vm0, %v38_v11 }
  0x39   :  { %310 = vmatpush3.xpose.msk.msra.mxu0 %vm49_vm0, %v38_v11 }
  0x3a   :  { %311 = vmatprep.subr.msk.mxu0 %vm49_vm0, %v37_v12 }
  0x3d   :  { %312 = vmatpush3.xpose.msk.msra.mxu0 %vm49_vm0, %v37_v12 }
  0x3e   :  { %313 = vmatprep.subr.msk.mxu0 %vm49_vm0, %v36_v13 }
  0x41   :  { %314 = vmatpush3.xpose.msk.msra.mxu0 %vm49_vm0, %v36_v13 }
  0x42   :  { %315 = vmatprep.subr.msk.mxu0 %vm49_vm0, %v35_v14 }
  0x45   :  { %316 = vmatpush3.xpose.msk.msra.mxu0 %vm49_vm0, %v35_v14 }
  0x46   :  { %317 = vmatprep.subr.msk.mxu0 %vm49_vm0, %v34_v15 }
  0x49   :  { %318 = vmatpush3.xpose.msk.msra.mxu0 %vm49_vm0, %v34_v15 }
  0x4a   :  { %319 = vmatprep.subr.msk.mxu0 %vm49_vm0, %v33_v16 }
  0x4d   :  { %320 = vmatpush3.xpose.msk.msra.mxu0 %vm49_vm0, %v33_v16 }
  0x50   :  { %322 = vmatmul.mubr.msk.f32.vlgmr.msra.gmra.mxu0 %vm49_vm0, %v32_v17 }
 0x110   :  { %v323_v18 = vpop.f32.mrf.mxu0 }
 0x111   :  { %v193_v23 = vmul.f32 %v323_v18, %v323_v18  ;;  %v187_v24 = vmul.f32 %v323_v18, %v269_v20 }
 0x112   :  { %v170_v19 = vpop.f32.mrf.mxu0 }
 0x113   :  { %v192_v21 = vmul.f32 %v170_v19, %v170_v19  ;;  %v186_v22 = vmul.f32 %v269_v20, %v170_v19 }
 0x115   :  { %194 = vadd.xlane.f32.xlu1 %v192_v21  ;;  %188 = vadd.xlane.f32.xlu0 %v186_v22 }
 0x119   :  { %196 = vadd.xlane.f32.xlu1 %v193_v23  ;;  %190 = vadd.xlane.f32.xlu0 %v187_v24 }
 0x19e   :  { %v195_v26 = vpop.xlane.xlu1 %194  ;;  %v189_v27 = vpop.xlane.xlu0 %188 }
 0x19f   :  { %v206_v28 = vadd.f32 1.0, %v189_v27  ;;  %v210_v29 = vmul.f32 %v209_v25, %v195_v26  ;;  %v199_v37 = vmul.f32 2.0, %v189_v27  ;;  %v204_v42 = vsub.f32 1.0, %v195_v26 }
 0x1a1   :  { %v212_v30 = vadd.f32 %v210_v29, %v206_v28  ;;  %v202_v43 = vadd.f32 %v201_v39, %v199_v37 }
 0x1a2   :  { %v197_v31 = vpop.xlane.xlu1 %196  ;;  %v191_v32 = vpop.xlane.xlu0 %190 }
 0x1a3   :  { %v211_v33 = vmul.f32 %v209_v25, %v197_v31  ;;  %328 = vrcp.f32 %v212_v30  ;;  %v207_v34 = vadd.f32 1.0, %v191_v32  ;;  %v200_v45 = vmul.f32 2.0, %v191_v32 }
 0x1a4   :  { %v205_v52 = vsub.f32 1.0, %v197_v31 }
 0x1a5   :  { %v213_v35 = vadd.f32 %v211_v33, %v207_v34  ;;  %v203_v53 = vadd.f32 %v201_v39, %v200_v45 }
 0x1a7   :  { %330 = vrcp.f32 %v213_v35 }
 0x1b0   :  { %v329_v36 = vpop.eup %328 }
 0x1b1   :  { %v216_v38 = vmul.f32 %v329_v36, %v212_v30 }
 0x1b3   :  { %v218_v40 = vsub.f32 2.0, %v216_v38 }
 0x1b4   :  { %v331_v41 = vpop.eup %330 }
 0x1b5   :  { %v220_v44 = vmul.f32 %v329_v36, %v218_v40  ;;  %v217_v46 = vmul.f32 %v331_v41, %v213_v35 }
 0x1b7   :  { %v222_v47 = vmul.f32 %v220_v44, %v202_v43  ;;  %v226_v48 = vmul.f32 %v220_v44, %v204_v42  ;;  %v219_v49 = vsub.f32 2.0, %v217_v46 }
 0x1b9   :  { %v224_v50 = vmul.f32 %v222_v47, %v170_v19  ;;  %v228_v51 = vmul.f32 %v269_v20, %v226_v48  ;;  %v221_v54 = vmul.f32 %v331_v41, %v219_v49 }
 0x1bb   :  { %v230_v55 = vadd.f32 %v228_v51, %v224_v50  ;;  %v223_v56 = vmul.f32 %v221_v54, %v203_v53  ;;  %v227_v57 = vmul.f32 %v221_v54, %v205_v52 }
 0x1bd   :  { %232 = vst [vmem:[#allocation5] sm:$0xff] %v230_v55  ;;  %v225_v58 = vmul.f32 %v323_v18, %v223_v56  ;;  %v229_v59 = vmul.f32 %v269_v20, %v227_v57 }
 0x1bf   :  { %v231_v60 = vadd.f32 %v229_v59, %v225_v58 }
 0x1c1   :  { %233 = vst [vmem:[#allocation5 + $0x8] sm:$0xff] %v231_v60 }
 0x1c2   :  { %355 = shalt.err (!%p352_p9)
}
 0x1c3   :  { %s370_s6 = smov 128   ;;  %s371_s7 = smov 8  }
 0x1c4   :  { %245 = dma.vmem_to_hbm [thread:$0]  %s240_s30, 256, %s498_s4, [#allocation3], %s370_s6, %s370_s6, %s371_s7  }
 0x1c5   :  { %366 = dma.done.wait [#allocation3], 256  }
 0x1c6   :  { %367 = vsyncadd [#allocation3], 4294967040 }
 0x1c7   :  { %249 = vsyncpa [#allocation3], 1 }
 0x1c8   :  { %250 = vsyncpa [#allocation4], 1 }

</bundles_post_ra>
